<compile_context>
chip_gen: v7x
topology: tpu7x:2x2x1
jax: 0.10.0
libtpu: 0.0.40
codegen_flags: <defaults>
</compile_context>

<pallas_src>
import functools

import jax
import jax.numpy as jnp
from jax import lax
from jax.experimental import pallas as pl
from jax.experimental.pallas import tpu as pltpu


def _entity_pool_kernel(x_ref, w_ref, b_ref, out_ref, col_acc,
                        *, n0, n1, d_in, d_out, tn0):
    """One grid step over a (tn0, n1*d_in) slab of entity-E0 rows.

    x_ref   : (tn0, n1*d_in)     lane-dense slab of the input relation
    w_ref   : (n1*d_in, 4*d_out) fused weights:
                cols [0 , d )  tile(W_pj ->E0) / n1
                cols [d , 2d)  tile(W_pi ->E1) / n0
                cols [2d, 3d)  tile(W_pij->E1) / (n0*n1)
                cols [3d, 4d)  tile(W_pij->E0) / (n0*n1)
    b_ref   : (2, d_out)         [bias enc(E0); bias enc(E1)]
    out_ref : (n0+n1, d_out)     combined output, VMEM-resident across the grid
    col_acc : (1, n1*d_in)       f32 column-sum accumulator (VMEM scratch)
    """
    i = pl.program_id(0)
    nsteps = n0 // tn0
    F = n1 * d_in

    @pl.when(i == 0)
    def _init():
        col_acc[...] = jnp.zeros_like(col_acc)

    x = x_ref[...]                                   # native dtype, lane-dense

    # enc(E0) rows for this slab: the E1-axis mean pool is folded into the
    # tiled/scaled weight, so this is one MXU pass (K = n1*d_in).
    y = jnp.dot(x, w_ref[...], preferred_element_type=jnp.float32)
    row_start = pl.multiple_of(i * tn0, tn0)
    out_ref[pl.ds(row_start, tn0), :] = y[:, :d_out]

    # accumulate raw column sums (used for the p_i and p_ij pools) in f32.
    col_acc[...] += jnp.sum(x.astype(jnp.float32), axis=0, keepdims=True)

    @pl.when(i == nsteps - 1)
    def _finalize():
        col_sum = col_acc[...]                                    # (1, F)
        # Build the finalization LHS without any in-kernel reshape:
        #   rows 0..n1-1 : col_sum masked to the k-th d_in channel group
        #   row  n1      : full col_sum (global sum row)
        lane = lax.broadcasted_iota(jnp.int32, (n1 + 1, F), 1)
        row = lax.broadcasted_iota(jnp.int32, (n1 + 1, F), 0)
        lo = row * d_in
        sel = ((lane >= lo) & (lane < lo + d_in)) | (row == n1)
        lhs = jnp.where(sel, jnp.broadcast_to(col_sum, (n1 + 1, F)), 0.0)
        res = jnp.dot(lhs, w_ref[...], preferred_element_type=jnp.float32)
        glob = res[n1:n1 + 1, :]                                  # (1, 4*d_out)

        # enc(E1) = p_i @ W2 + p_ij @ W3 + bias1
        out_ref[pl.ds(n0, n1), :] = (res[:n1, d_out:2 * d_out]
                                     + glob[:, 2 * d_out:3 * d_out]
                                     + b_ref[1:2, :])

        # broadcast the p_ij term (+ bias0) onto all enc(E0) rows, slab by slab
        # to keep vreg pressure bounded for large n0.
        y0_add = glob[:, 3 * d_out:4 * d_out] + b_ref[0:1, :]     # (1, d_out)

        def _add_chunk(c, carry):
            s = pl.multiple_of(c * tn0, tn0)
            out_ref[pl.ds(s, tn0), :] = out_ref[pl.ds(s, tn0), :] + y0_add
            return carry

        lax.fori_loop(0, nsteps, _add_chunk, 0, unroll=nsteps <= 8)


def _pick_block_n0(n0, bytes_per_row, block_n0=None):
    assert n0 % 8 == 0, "n0 must be a multiple of 8 (pad E0 rows otherwise)"
    if block_n0 is None:
        # Largest multiple-of-8 divisor of n0 whose double-buffered slab stays
        # well under the scoped-VMEM budget on every chip (v7x: 64 MiB VMEM).
        budget = 4 * 1024 * 1024            # bytes per input buffer
        block_n0 = 8
        for cand in range(8, min(n0, 1024) + 1, 8):
            if n0 % cand == 0 and cand * bytes_per_row <= budget:
                block_n0 = cand
    assert block_n0 % 8 == 0 and n0 % block_n0 == 0, (n0, block_n0)
    return block_n0


def sparse_matrix_equivariant_pooling_forward(x, weights, bias0, bias1,
                                              block_n0=None):
    """x: (n0, n1, d_in); weights: (4, d_in, d_out) stacked as
    [W_pj->E0, W_pij->E0, W_pi->E1, W_pij->E1]; bias0/bias1: (1, d_out).
    Returns (enc_E0 (n0, d_out), enc_E1 (n1, d_out))."""
    n0, n1, d_in = x.shape
    d_out = weights.shape[-1]
    F = n1 * d_in

    # Lane-dense, row-major 2D view of the input (free reshape in the wrapper).
    x2 = x.reshape(n0, F)

    # Fold the mean divisors and the flattened-layout pooling into the weights
    # (one-time, outside the hot path).
    w0t = jnp.tile(weights[0], (n1, 1)) * (1.0 / n1)            # p_j  -> enc(E0)
    w2t = jnp.tile(weights[2], (n1, 1)) * (1.0 / n0)            # p_i  -> enc(E1)
    w3t = jnp.tile(weights[3], (n1, 1)) * (1.0 / (n0 * n1))     # p_ij -> enc(E1)
    w1t = jnp.tile(weights[1], (n1, 1)) * (1.0 / (n0 * n1))     # p_ij -> enc(E0)
    w_all = jnp.concatenate([w0t, w2t, w3t, w1t], axis=1)       # (F, 4*d_out)

    b = jnp.concatenate([bias0, bias1], axis=0)                 # (2, d_out)

    tn0 = _pick_block_n0(n0, F * x2.dtype.itemsize, block_n0)
    kernel = functools.partial(_entity_pool_kernel, n0=n0, n1=n1, d_in=d_in,
                               d_out=d_out, tn0=tn0)

    out = pl.pallas_call(
        kernel,
        out_shape=jax.ShapeDtypeStruct((n0 + n1, d_out), jnp.float32),
        grid=(n0 // tn0,),
        in_specs=[
            pl.BlockSpec((tn0, F), lambda i: (i, 0)),            # x slab
            pl.BlockSpec((F, 4 * d_out), lambda i: (0, 0)),      # fused weights
            pl.BlockSpec((2, d_out), lambda i: (0, 0)),          # stacked biases
        ],
        out_specs=pl.BlockSpec((n0 + n1, d_out), lambda i: (0, 0)),
        scratch_shapes=[pltpu.VMEM((1, F), jnp.float32)],
        compiler_params=pltpu.CompilerParams(
            dimension_semantics=("arbitrary",),      # reduction / resident out
            vmem_limit_bytes=32 * 1024 * 1024),
    )(x2, w_all, b)

    return out[:n0], out[n0:]


def reference_forward(x, weights, bias0, bias1):
    """Plain-JAX reference of the same dense semantics (for validation)."""
    p_row = jnp.mean(x, axis=1)                      # (n0, d_in)
    p_col = jnp.mean(x, axis=0)                      # (n1, d_in)
    p_all = jnp.mean(x, axis=(0, 1))[None, :]        # (1, d_in)
    hi = jax.lax.Precision.HIGHEST
    y0 = (jnp.dot(p_row, weights[0], precision=hi)
          + jnp.dot(p_all, weights[1], precision=hi) + bias0)
    y1 = (jnp.dot(p_col, weights[2], precision=hi)
          + jnp.dot(p_all, weights[3], precision=hi) + bias1)
    return y0, y1


if __name__ == "__main__":
    # small, deterministic problem sizes
    n0, n1 = 16, 32          # instances of entity E0, E1
    d_in, d_out = 16, 8      # per-relation input / output channel dims

    key = jax.random.PRNGKey(0)
    kx, kw = jax.random.split(key)

    # input relation values (dense view of the SparseMatrix for relation R0)
    x = jax.random.normal(kx, (n0, n1, d_in), dtype=jnp.float32)

    # weights: per block nn.Parameter(n_params, in_dim, out_dim).uniform_(±stdv)
    # with n_params = 2 per block and 2 blocks -> stacked into (4, d_in, d_out).
    stdv = 1.0 / (d_in ** 0.5)
    weights = jax.random.uniform(
        kw, (4, d_in, d_out), minval=-stdv, maxval=stdv, dtype=jnp.float32)

    # biases: output relations are sets -> torch.zeros(1, out_dim) each
    bias0 = jnp.zeros((1, d_out), dtype=jnp.float32)
    bias1 = jnp.zeros((1, d_out), dtype=jnp.float32)

    # block_n0=8 -> 2 grid steps, so the accumulate/finalize path is exercised.
    y0, y1 = sparse_matrix_equivariant_pooling_forward(
        x, weights, bias0, bias1, block_n0=8)
    jax.block_until_ready((y0, y1))

    r0, r1 = reference_forward(x, weights, bias0, bias1)
    # The fused scaled-weight path reorders the f32 accumulation (and MXU f32
    # matmuls may use reduced-precision passes), so tolerance is slightly
    # looser than exact-bitwise.
    assert jnp.allclose(y0, r0, atol=1e-3, rtol=1e-3), float(
        jnp.max(jnp.abs(y0 - r0)))
    assert jnp.allclose(y1, r1, atol=1e-3, rtol=1e-3), float(
        jnp.max(jnp.abs(y1 - r1)))

    print("KERNEL_OK")
</pallas_src>

<mosaic_0001>
module attributes {stable_mosaic.version = 11 : i64} {
  func.func @_entity_pool_kernel(%arg0: i32, %arg1: memref<8x512xf32, #tpu.memory_space<vmem>>, %arg2: memref<512x32xf32, #tpu.memory_space<vmem>>, %arg3: memref<2x8xf32, #tpu.memory_space<vmem>>, %arg4: memref<48x8xf32, #tpu.memory_space<vmem>>, %arg5: memref<1x512xf32, #tpu.memory_space<vmem>>) attributes {dimension_semantics = [#tpu.dimension_semantics<arbitrary>], iteration_bounds = array<i64: 2>, scalar_prefetch = 0 : i64, scratch_operands = 1 : i64, tpu.core_type = #tpu.core_type<tc>, window_params = [{transform_indices = @transform_0, window_bounds = array<i64: 8, 512>}, {pipeline_mode = #tpu.pipeline_mode<synchronous>, transform_indices = @transform_1, window_bounds = array<i64: 512, 32>}, {pipeline_mode = #tpu.pipeline_mode<synchronous>, transform_indices = @transform_2, window_bounds = array<i64: 2, 8>}, {pipeline_mode = #tpu.pipeline_mode<synchronous>, transform_indices = @transform_3, window_bounds = array<i64: 48, 8>}]} {
    %c0_i32 = arith.constant 0 : i32
    %0 = arith.cmpi eq, %arg0, %c0_i32 : i32
    %1 = arith.extui %0 : i1 to i32
    %c0_i32_0 = arith.constant 0 : i32
    %2 = arith.cmpi ne, %1, %c0_i32_0 : i32
    scf.if %2 {
      %cst_11 = arith.constant 0.000000e+00 : f32
      %19 = vector.broadcast %cst_11 : f32 to vector<1x512xf32>
      %c0_12 = arith.constant 0 : index
      %c0_13 = arith.constant 0 : index
      %20 = vector.load %arg5[%c0_12, %c0_13] : memref<1x512xf32, #tpu.memory_space<vmem>>, vector<1x512xf32>
      tpu.vector_store %arg5[%c0_12, %c0_13], %19 {strides = array<i32>} : memref<1x512xf32, #tpu.memory_space<vmem>>, vector<1x512xf32>,
    } else {
    }
    %c0 = arith.constant 0 : index
    %c0_1 = arith.constant 0 : index
    %3 = vector.load %arg1[%c0, %c0_1] : memref<8x512xf32, #tpu.memory_space<vmem>>, vector<8x512xf32>
    %c0_2 = arith.constant 0 : index
    %c0_3 = arith.constant 0 : index
    %4 = vector.load %arg2[%c0_2, %c0_3] : memref<512x32xf32, #tpu.memory_space<vmem>>, vector<512x32xf32>
    %cst = arith.constant dense<0.000000e+00> : vector<8x32xf32>
    %5 = tpu.matmul %3, %4, %cst {dimension_numbers = #tpu.dot_dimension_numbers<[1], [0], [0], [1], [0, 0, 1, 1], [], []>} : vector<8x512xf32>, vector<512x32xf32>, vector<8x32xf32> -> vector<8x32xf32>
    %c8_i32 = arith.constant 8 : i32
    %6 = arith.muli %arg0, %c8_i32 : i32
    %7 = tpu.assume_multiple %6, 8 : i32
    %8 = vector.extract_strided_slice %5 {offsets = [0, 0], sizes = [8, 8], strides = [1, 1]} : vector<8x32xf32> to vector<8x8xf32>
    %9 = arith.index_cast %7 : i32 to index
    %c0_4 = arith.constant 0 : index
    %10 = vector.load %arg4[%9, %c0_4] : memref<48x8xf32, #tpu.memory_space<vmem>>, vector<8x8xf32>
    tpu.vector_store %arg4[%9, %c0_4], %8 {strides = array<i32>} : memref<48x8xf32, #tpu.memory_space<vmem>>, vector<8x8xf32>,
    %c0_5 = arith.constant 0 : index
    %c0_6 = arith.constant 0 : index
    %11 = vector.load %arg5[%c0_5, %c0_6] : memref<1x512xf32, #tpu.memory_space<vmem>>, vector<1x512xf32>
    %cst_7 = arith.constant dense<0.000000e+00> : vector<512xf32>
    %12 = vector.multi_reduction <add>, %3, %cst_7 [0] : vector<8x512xf32> to vector<512xf32>
    %13 = vector.shape_cast %12 : vector<512xf32> to vector<1x512xf32>
    %14 = arith.addf %11, %13 : vector<1x512xf32>
    %c0_8 = arith.constant 0 : index
    %c0_9 = arith.constant 0 : index
    %15 = vector.load %arg5[%c0_8, %c0_9] : memref<1x512xf32, #tpu.memory_space<vmem>>, vector<1x512xf32>
    tpu.vector_store %arg5[%c0_8, %c0_9], %14 {strides = array<i32>} : memref<1x512xf32, #tpu.memory_space<vmem>>, vector<1x512xf32>,
    %c1_i32 = arith.constant 1 : i32
    %16 = arith.cmpi eq, %arg0, %c1_i32 : i32
    %17 = arith.extui %16 : i1 to i32
    %c0_i32_10 = arith.constant 0 : i32
    %18 = arith.cmpi ne, %17, %c0_i32_10 : i32
    scf.if %18 {
      %c0_11 = arith.constant 0 : index
      %c0_12 = arith.constant 0 : index
      %19 = vector.load %arg5[%c0_11, %c0_12] : memref<1x512xf32, #tpu.memory_space<vmem>>, vector<1x512xf32>
      %20 = tpu.iota {dimensions = array<i32: 1>} : vector<33x512xi32>
      %21 = tpu.iota {dimensions = array<i32: 0>} : vector<33x512xi32>
      %c16_i32 = arith.constant 16 : i32
      %22 = vector.broadcast %c16_i32 : i32 to vector<33x512xi32>
      %23 = arith.muli %21, %22 : vector<33x512xi32>
      %24 = arith.cmpi sge, %20, %23 : vector<33x512xi32>
      %c16_i32_13 = arith.constant 16 : i32
      %25 = vector.broadcast %c16_i32_13 : i32 to vector<33x512xi32>
      %26 = arith.addi %23, %25 : vector<33x512xi32>
      %27 = arith.cmpi slt, %20, %26 : vector<33x512xi32>
      %28 = arith.andi %24, %27 : vector<33x512xi1>
      %c32_i32 = arith.constant 32 : i32
      %29 = vector.broadcast %c32_i32 : i32 to vector<33x512xi32>
      %30 = arith.cmpi eq, %21, %29 : vector<33x512xi32>
      %31 = arith.ori %28, %30 : vector<33x512xi1>
      %32 = vector.shape_cast %19 : vector<1x512xf32> to vector<1x512xf32>
      %33 = vector.broadcast %32 : vector<1x512xf32> to vector<33x512xf32>
      %cst_14 = arith.constant 0.000000e+00 : f32
      %34 = vector.broadcast %cst_14 : f32 to vector<33x512xf32>
      %35 = arith.select %31, %33, %34 : vector<33x512xi1>, vector<33x512xf32>
      %c0_15 = arith.constant 0 : index
      %c0_16 = arith.constant 0 : index
      %36 = vector.load %arg2[%c0_15, %c0_16] : memref<512x32xf32, #tpu.memory_space<vmem>>, vector<512x32xf32>
      %cst_17 = arith.constant dense<0.000000e+00> : vector<33x32xf32>
      %37 = tpu.matmul %35, %36, %cst_17 {dimension_numbers = #tpu.dot_dimension_numbers<[1], [0], [0], [1], [0, 0, 1, 1], [], []>} : vector<33x512xf32>, vector<512x32xf32>, vector<33x32xf32> -> vector<33x32xf32>
      %38 = vector.extract_strided_slice %37 {offsets = [32, 0], sizes = [1, 32], strides = [1, 1]} : vector<33x32xf32> to vector<1x32xf32>
      %39 = vector.extract_strided_slice %37 {offsets = [0, 8], sizes = [32, 8], strides = [1, 1]} : vector<33x32xf32> to vector<32x8xf32>
      %40 = vector.extract_strided_slice %38 {offsets = [0, 16], sizes = [1, 8], strides = [1, 1]} : vector<1x32xf32> to vector<1x8xf32>
      %41 = vector.broadcast %40 : vector<1x8xf32> to vector<32x8xf32>
      %42 = arith.addf %39, %41 : vector<32x8xf32>
      %c1 = arith.constant 1 : index
      %c0_18 = arith.constant 0 : index
      %43 = vector.load %arg3[%c1, %c0_18] : memref<2x8xf32, #tpu.memory_space<vmem>>, vector<1x8xf32>
      %44 = vector.broadcast %43 : vector<1x8xf32> to vector<32x8xf32>
      %45 = arith.addf %42, %44 : vector<32x8xf32>
      %c16 = arith.constant 16 : index
      %c0_19 = arith.constant 0 : index
      %46 = vector.load %arg4[%c16, %c0_19] : memref<48x8xf32, #tpu.memory_space<vmem>>, vector<32x8xf32>
      tpu.vector_store %arg4[%c16, %c0_19], %45 {strides = array<i32>} : memref<48x8xf32, #tpu.memory_space<vmem>>, vector<32x8xf32>,
      %47 = vector.extract_strided_slice %38 {offsets = [0, 24], sizes = [1, 8], strides = [1, 1]} : vector<1x32xf32> to vector<1x8xf32>
      %c0_20 = arith.constant 0 : index
      %c0_21 = arith.constant 0 : index
      %48 = vector.load %arg3[%c0_20, %c0_21] : memref<2x8xf32, #tpu.memory_space<vmem>>, vector<1x8xf32>
      %49 = arith.addf %47, %48 : vector<1x8xf32>
      %c0_i32_22 = arith.constant 0 : i32
      %c8_i32_23 = arith.constant 8 : i32
      %50 = arith.muli %c0_i32_22, %c8_i32_23 : i32
      %51 = tpu.assume_multiple %50, 8 : i32
      %52 = arith.index_cast %51 : i32 to index
      %c0_24 = arith.constant 0 : index
      %53 = vector.load %arg4[%52, %c0_24] : memref<48x8xf32, #tpu.memory_space<vmem>>, vector<8x8xf32>
      %54 = vector.broadcast %49 : vector<1x8xf32> to vector<8x8xf32>
      %55 = arith.addf %53, %54 : vector<8x8xf32>
      %56 = arith.index_cast %51 : i32 to index
      %c0_25 = arith.constant 0 : index
      %57 = vector.load %arg4[%56, %c0_25] : memref<48x8xf32, #tpu.memory_space<vmem>>, vector<8x8xf32>
      tpu.vector_store %arg4[%56, %c0_25], %55 {strides = array<i32>} : memref<48x8xf32, #tpu.memory_space<vmem>>, vector<8x8xf32>,
      %c1_i32_26 = arith.constant 1 : i32
      %c8_i32_27 = arith.constant 8 : i32
      %58 = arith.muli %c1_i32_26, %c8_i32_27 : i32
      %59 = tpu.assume_multiple %58, 8 : i32
      %60 = arith.index_cast %59 : i32 to index
      %c0_28 = arith.constant 0 : index
      %61 = vector.load %arg4[%60, %c0_28] : memref<48x8xf32, #tpu.memory_space<vmem>>, vector<8x8xf32>
      %62 = vector.broadcast %49 : vector<1x8xf32> to vector<8x8xf32>
      %63 = arith.addf %61, %62 : vector<8x8xf32>
      %64 = arith.index_cast %59 : i32 to index
      %c0_29 = arith.constant 0 : index
      %65 = vector.load %arg4[%64, %c0_29] : memref<48x8xf32, #tpu.memory_space<vmem>>, vector<8x8xf32>
      tpu.vector_store %arg4[%64, %c0_29], %63 {strides = array<i32>} : memref<48x8xf32, #tpu.memory_space<vmem>>, vector<8x8xf32>,
      %c2_i32 = arith.constant 2 : i32
    } else {
    }
    return
  }
  func.func @transform_0(%arg0: i32) -> (i32, i32) {
    %c0_i32 = arith.constant 0 : i32
    %c0_i32_0 = arith.constant 0 : i32
    return %arg0, %c0_i32 : i32, i32
  }
  func.func @transform_1(%arg0: i32) -> (i32, i32) {
    %c0_i32 = arith.constant 0 : i32
    %c0_i32_0 = arith.constant 0 : i32
    %c0_i32_1 = arith.constant 0 : i32
    return %c0_i32, %c0_i32_0 : i32, i32
  }
  func.func @transform_2(%arg0: i32) -> (i32, i32) {
    %c0_i32 = arith.constant 0 : i32
    %c0_i32_0 = arith.constant 0 : i32
    %c0_i32_1 = arith.constant 0 : i32
    return %c0_i32, %c0_i32_0 : i32, i32
  }
  func.func @transform_3(%arg0: i32) -> (i32, i32) {
    %c0_i32 = arith.constant 0 : i32
    %c0_i32_0 = arith.constant 0 : i32
    %c0_i32_1 = arith.constant 0 : i32
    return %c0_i32, %c0_i32_0 : i32, i32
  }
}

</mosaic_0001>

<bundles_post_ra>
// kernel: tpu_custom_call.1
= control target key start
LH: loop header
LB: loop body
LE: loop exit
PB: predicated region body
PF: predicated region fallthrough
CT: control target
= control target key end

     0   :  { %s1304_s12 = smov 0   ;;  %s2027_s0 = inlined_call_operand.vmem [shape: f32[16,512], index: 0, kind: input, shape index: {}]   ;;  %s2028_s1 = inlined_call_operand.vmem [shape: f32[512,32], index: 1, kind: input, shape index: {}]   ;;  %s2029_s2 = inlined_call_operand.vmem [shape: f32[2,8], index: 2, kind: input, shape index: {}]   ;;  %s2030_s3 = inlined_call_operand.vmem [shape: f32[48,8], index: 3, kind: output, shape index: {}]  }
   0x1 LB: > { %s1310_s13 = sadd.s32 4294967295, %s1276_s12   ;;  %p932_p0 = scmp.ge.s32.totalorder %s1276_s12, 1  ;;  %s1276_s12 = sphi %s1304_s12, %s13_s12  }
   0x2   : > { %p132_p1 = scmp.lt.s32.totalorder %s1276_s12, 3 }
   0x4   : > { %p133_p2 = pnand %p932_p0, %p132_p1 }
   0x5   : > { %p151_p3 = scmp.lt.s32.totalorder (!%p133_p2), %s1310_s13, 1  ;;  %p935_p4 = scmp.ne.s32.totalorder (!%p133_p2), %s1310_s13, 0 }
   0x6   : > { %136 = sbr.rel (%p133_p2) target bundleno = 766 (0x2fe), region = 32 }
   0xd   : > { %s152_s14 = scalar_select %p151_p3, %s1310_s13, 1 }
   0xe   : > { %159 = sbr.rel (%p935_p4) target bundleno = 21 (0x15), region = 36  ;;  %v160_v0 = vlaneseq (!%p935_p4)  ;;  %v1278_v1 = vmov (!%p935_p4), 0.0  }
   0xf   : > { %s963_s15 = sshll.u32 %s152_s14, 5 }
  0x10   : > { %s1319_s18 = scalar_lea.vmem %s2027_s0, %s963_s15  ;;  %vm162_vm0 = vcmp.lt.s32.totalorder (!%p935_p4), %v160_v0, 512 }
  0x11   : > { %164 = vst.msk [vmem:[#allocation2] sm:$0xf] (!%p935_p4), %vm162_vm0, %v1278_v1 }
  0x15 PF: > { %v185_v2 = vld [vmem:[%s2028_s1 + $0x80] sm:$0xff]  ;;  %v186_v3 = vld [vmem:[%s2028_s1 + $0x88] sm:$0xff]  ;;  %v187_v13 = vld [vmem:[%s2028_s1 + $0x90] sm:$0xff]  ;;  %s936_s26 = sshll.u32 %s1310_s13, 3  ;;  %vm2031_vm2 = vcmask 64512   ;;  %p937_p5 = scmp.ne.s32.totalorder %s1310_s13, 1 }
  0x16   : > { %v217_v4 = vld [vmem:[%s2028_s1 + $0x180] sm:$0xff]  ;;  %v1128_v5 = vpack.c.bf16 %v186_v3, %v185_v2  ;;  %v218_v6 = vld [vmem:[%s2028_s1 + $0x188] sm:$0xff]  ;;  %v188_v15 = vld [vmem:[%s2028_s1 + $0x98] sm:$0xff]  ;;  %s374_s29 = scalar_lea.vmem %s2030_s3, %s936_s26  ;;  %s1280_s22 = smov (!%p937_p5), 24  }
  0x17   : > { %v169_v7 = vld [vmem:[%s2028_s1] sm:$0xff]  ;;  %v170_v8 = vld [vmem:[%s2028_s1 + $0x8] sm:$0xff]  ;;  %v1160_v9 = vpack.c.bf16 %v218_v6, %v217_v4  ;;  %v219_v16 = vld [vmem:[%s2028_s1 + $0x190] sm:$0xff]  ;;  %v1132_v18 = vpack.c.bf16 %v188_v15, %v187_v13  ;;  %s1281_s6 = smov (!%p937_p5), 8   ;;  %s1282_s7 = smov (!%p937_p5), 120  }
  0x18   : > { %v1130_v10 = vpack.c.bf16 %v170_v8, %v169_v7  ;;  %v201_v11 = vld [vmem:[%s2028_s1 + $0x100] sm:$0xff]  ;;  %v202_v12 = vld [vmem:[%s2028_s1 + $0x108] sm:$0xff]  ;;  %1129 = vmatprep.subr.bf16.mxu0 %v1128_v5  ;;  %v220_v17 = vld [vmem:[%s2028_s1 + $0x198] sm:$0xff]  ;;  %s1283_s8 = smov (!%p937_p5), 104  }
  0x19   : > { %v1162_v14 = vpack.c.bf16 %v202_v12, %v201_v11  ;;  %1161 = vmatprep.subr.bf16.mxu1 %v1160_v9  ;;  %v1164_v19 = vpack.c.bf16 %v220_v17, %v219_v16  ;;  %v171_v20 = vld [vmem:[%s2028_s1 + $0x10] sm:$0xff]  ;;  %v172_v21 = vld [vmem:[%s2028_s1 + $0x18] sm:$0xff]  ;;  %v189_v25 = vld [vmem:[%s2028_s1 + $0xa0] sm:$0xff] }
  0x1a   : > { %1131 = vmatpush3.bf16.msra.mxu0 %v1130_v10  ;;  %v203_v22 = vld [vmem:[%s2028_s1 + $0x110] sm:$0xff]  ;;  %v1134_v23 = vpack.c.bf16 %v172_v21, %v171_v20  ;;  %v204_v24 = vld [vmem:[%s2028_s1 + $0x118] sm:$0xff]  ;;  %v190_v26 = vld [vmem:[%s2028_s1 + $0xa8] sm:$0xff] }
  0x1b   : > { %1163 = vmatpush3.bf16.msra.mxu1 %v1162_v14  ;;  %1133 = vmatprep.subr.bf16.mxu0 %v1132_v18  ;;  %v1166_v27 = vpack.c.bf16 %v204_v24, %v203_v22  ;;  %v1136_v28 = vpack.c.bf16 %v190_v26, %v189_v25  ;;  %v221_v29 = vld [vmem:[%s2028_s1 + $0x1a0] sm:$0xff]  ;;  %v222_v30 = vld [vmem:[%s2028_s1 + $0x1a8] sm:$0xff]  ;;  %v191_v37 = vld [vmem:[%s2028_s1 + $0xb0] sm:$0xff] }
  0x1c   : > { %1165 = vmatprep.subr.bf16.mxu1 %v1164_v19  ;;  %v173_v31 = vld [vmem:[%s2028_s1 + $0x20] sm:$0xff]  ;;  %v1168_v32 = vpack.c.bf16 %v222_v30, %v221_v29  ;;  %v174_v33 = vld [vmem:[%s2028_s1 + $0x28] sm:$0xff]  ;;  %v192_v38 = vld [vmem:[%s2028_s1 + $0xb8] sm:$0xff] }
  0x1d   : > { %v205_v34 = vld [vmem:[%s2028_s1 + $0x120] sm:$0xff]  ;;  %v206_v35 = vld [vmem:[%s2028_s1 + $0x128] sm:$0xff]  ;;  %v1138_v36 = vpack.c.bf16 %v174_v33, %v173_v31  ;;  %v223_v39 = vld [vmem:[%s2028_s1 + $0x1b0] sm:$0xff]  ;;  %v1140_v41 = vpack.c.bf16 %v192_v38, %v191_v37  ;;  %v411_v31 = vlaneseq }
  0x1e   : > { %1135 = vmatpush3.bf16.msra.mxu0 %v1134_v23  ;;  %v1170_v40 = vpack.c.bf16 %v206_v35, %v205_v34  ;;  %v224_v42 = vld [vmem:[%s2028_s1 + $0x1b8] sm:$0xff]  ;;  %v175_v43 = vld [vmem:[%s2028_s1 + $0x30] sm:$0xff]  ;;  %v193_v48 = vld [vmem:[%s2028_s1 + $0xc0] sm:$0xff] }
  0x1f   : > { %1167 = vmatpush3.bf16.msra.mxu1 %v1166_v27  ;;  %1137 = vmatprep.subr.bf16.mxu0 %v1136_v28  ;;  %v176_v44 = vld [vmem:[%s2028_s1 + $0x38] sm:$0xff]  ;;  %v1172_v45 = vpack.c.bf16 %v224_v42, %v223_v39  ;;  %v207_v46 = vld [vmem:[%s2028_s1 + $0x130] sm:$0xff]  ;;  %v194_v49 = vld [vmem:[%s2028_s1 + $0xc8] sm:$0xff]  ;;  %vm434_vm1 = vcmp.lt.s32.totalorder %v411_v31, 512 }
  0x20   : > { %1169 = vmatprep.subr.bf16.mxu1 %v1168_v32  ;;  %v208_v47 = vld [vmem:[%s2028_s1 + $0x138] sm:$0xff]  ;;  %v225_v50 = vld [vmem:[%s2028_s1 + $0x1c0] sm:$0xff]  ;;  %v226_v51 = vld [vmem:[%s2028_s1 + $0x1c8] sm:$0xff]  ;;  %v1142_v52 = vpack.c.bf16 %v176_v44, %v175_v43  ;;  %v1144_v54 = vpack.c.bf16 %v194_v49, %v193_v48 }
  0x21   : > { %v1174_v53 = vpack.c.bf16 %v208_v47, %v207_v46  ;;  %v177_v55 = vld [vmem:[%s2028_s1 + $0x40] sm:$0xff]  ;;  %v178_v56 = vld [vmem:[%s2028_s1 + $0x48] sm:$0xff]  ;;  %v1176_v58 = vpack.c.bf16 %v226_v51, %v225_v50  ;;  %v195_v60 = vld [vmem:[%s2028_s1 + $0xd0] sm:$0xff] }
  0x22   : > { %1139 = vmatpush3.bf16.msra.mxu0 %v1138_v36  ;;  %v209_v57 = vld [vmem:[%s2028_s1 + $0x140] sm:$0xff]  ;;  %v210_v59 = vld [vmem:[%s2028_s1 + $0x148] sm:$0xff]  ;;  %v196_v61 = vld [vmem:[%s2028_s1 + $0xd8] sm:$0xff]  ;;  %v1146_v0 = vpack.c.bf16 %v178_v56, %v177_v55 }
  0x23   : > { %1171 = vmatpush3.bf16.msra.mxu1 %v1170_v40  ;;  %1141 = vmatprep.subr.bf16.mxu0 %v1140_v41  ;;  %v227_v62 = vld [vmem:[%s2028_s1 + $0x1d0] sm:$0xff]  ;;  %v228_v63 = vld [vmem:[%s2028_s1 + $0x1d8] sm:$0xff]  ;;  %v1178_v1 = vpack.c.bf16 %v210_v59, %v209_v57  ;;  %v1148_v2 = vpack.c.bf16 %v196_v61, %v195_v60  ;;  %v197_v8 = vld [vmem:[%s2028_s1 + $0xe0] sm:$0xff]  ;;  %v1279_v41 = vmov 1966171168  }
  0x24   : > { %1173 = vmatprep.subr.bf16.mxu1 %v1172_v45  ;;  %v179_v3 = vld [vmem:[%s2028_s1 + $0x50] sm:$0xff]  ;;  %v180_v4 = vld [vmem:[%s2028_s1 + $0x58] sm:$0xff]  ;;  %v1180_v6 = vpack.c.bf16 %v228_v63, %v227_v62  ;;  %v198_v9 = vld [vmem:[%s2028_s1 + $0xe8] sm:$0xff]  ;;  %v409_v42 = vunpack.c.l.s4 %v1279_v41 }
  0x25   : > { %v211_v5 = vld [vmem:[%s2028_s1 + $0x150] sm:$0xff]  ;;  %v212_v7 = vld [vmem:[%s2028_s1 + $0x158] sm:$0xff]  ;;  %v229_v10 = vld [vmem:[%s2028_s1 + $0x1e0] sm:$0xff]  ;;  %v1150_v13 = vpack.c.bf16 %v180_v4, %v179_v3  ;;  %v1152_v18 = vpack.c.bf16 %v198_v9, %v197_v8 }
  0x26   : > { %1143 = vmatpush3.bf16.msra.mxu0 %v1142_v52  ;;  %v230_v11 = vld [vmem:[%s2028_s1 + $0x1e8] sm:$0xff]  ;;  %v181_v12 = vld [vmem:[%s2028_s1 + $0x60] sm:$0xff]  ;;  %v1182_v17 = vpack.c.bf16 %v212_v7, %v211_v5  ;;  %v199_v19 = vld [vmem:[%s2028_s1 + $0xf0] sm:$0xff]  ;;  %v410_v57 = vunpack.c.0.s8 %v409_v42 }
  0x27   : > { %1175 = vmatpush3.bf16.msra.mxu1 %v1174_v53  ;;  %1145 = vmatprep.subr.bf16.mxu0 %v1144_v54  ;;  %v182_v14 = vld [vmem:[%s2028_s1 + $0x68] sm:$0xff]  ;;  %v213_v15 = vld [vmem:[%s2028_s1 + $0x160] sm:$0xff]  ;;  %v168_v21 = vld [vmem:[%s1319_s18 + $0x18] sm:$0xff]  ;;  %v1184_v22 = vpack.c.bf16 %v230_v11, %v229_v10  ;;  %v1519_v54 = vshrl.u32 %v411_v31, 7 }
  0x28   : > { %1177 = vmatprep.subr.bf16.mxu1 %v1176_v58  ;;  %v214_v16 = vld [vmem:[%s2028_s1 + $0x168] sm:$0xff]  ;;  %v200_v23 = vld [vmem:[%s2028_s1 + $0xf8] sm:$0xff]  ;;  %v396_v25 = vrot.slane %v168_v21, 4  ;;  %v165_v26 = vld [vmem:[%s1319_s18] sm:$0xff]  ;;  %367 = vmatprep.mubr.f32.mxu1 %v168_v21  ;;  %v1154_v33 = vpack.c.bf16 %v182_v14, %v181_v12 }
  0x29   : > { %v166_v20 = vld [vmem:[%s1319_s18 + $0x8] sm:$0xff]  ;;  %v167_v27 = vld [vmem:[%s1319_s18 + $0x10] sm:$0xff]  ;;  %v232_v29 = vld [vmem:[%s2028_s1 + $0x1f8] sm:$0xff]  ;;  %v378_v30 = vrot.slane %v165_v26, 4  ;;  %v1186_v34 = vpack.c.bf16 %v214_v16, %v213_v15  ;;  %v1156_v37 = vpack.c.bf16 %v200_v23, %v199_v19 }
  0x2a   : > { %1147 = vmatpush3.bf16.msra.mxu0 %v1146_v0  ;;  %297 = vmatprep.mubr.f32.mxu0 %v166_v20  ;;  %v384_v24 = vrot.slane %v166_v20, 4  ;;  %v231_v28 = vld [vmem:[%s2028_s1 + $0x1f0] sm:$0xff]  ;;  %v390_v32 = vrot.slane %v167_v27, 4  ;;  %v397_v36 = vadd.f32 %v396_v25, %v168_v21  ;;  %v184_v39 = vld [vmem:[%s2028_s1 + $0x78] sm:$0xff]  ;;  %v377_v9 = vld [vmem:[#allocation2] sm:$0xf] }
  0x2b   : > { %1179 = vmatpush3.bf16.msra.mxu1 %v1178_v1  ;;  %1149 = vmatprep.subr.bf16.mxu0 %v1148_v2  ;;  %v183_v38 = vld [vmem:[%s2028_s1 + $0x70] sm:$0xff]  ;;  %v379_v40 = vadd.f32 %v378_v30, %v165_v26  ;;  %v1188_v44 = vpack.c.bf16 %v232_v29, %v231_v28  ;;  %v216_v46 = vld [vmem:[%s2028_s1 + $0x178] sm:$0xff]  ;;  %v413_v2 = vsub.s32 %v410_v57, %v1519_v54  ;;  %v605_v19 = vld [vmem:[%s2028_s1 + $0x80] sm:$0xff] (!%p937_p5) }
  0x2c   : > { %1181 = vmatprep.subr.bf16.mxu1 %v1180_v6  ;;  %v385_v35 = vadd.f32 %v384_v24, %v166_v20  ;;  %v391_v43 = vadd.f32 %v390_v32, %v167_v27  ;;  %v215_v45 = vld [vmem:[%s2028_s1 + $0x170] sm:$0xff]  ;;  %v398_v48 = vrot.slane %v397_v36, 2  ;;  %v1158_v51 = vpack.c.bf16 %v184_v39, %v183_v38  ;;  %v606_v20 = vld [vmem:[%s2028_s1 + $0x88] sm:$0xff] (!%p937_p5)  ;;  %v637_v21 = vld [vmem:[%s2028_s1 + $0x180] sm:$0xff] (!%p937_p5) }
  0x2d   : > { %v380_v49 = vrot.slane %v379_v40, 2  ;;  %v1190_v55 = vpack.c.bf16 %v216_v46, %v215_v45  ;;  %v638_v23 = vld [vmem:[%s2028_s1 + $0x188] sm:$0xff] (!%p937_p5)  ;;  %v589_v24 = vld [vmem:[%s2028_s1] sm:$0xff] (!%p937_p5)  ;;  %v607_v30 = vld [vmem:[%s2028_s1 + $0x90] sm:$0xff] (!%p937_p5) }
  0x2e   : > { %1151 = vmatpush3.bf16.msra.mxu0 %v1150_v13  ;;  %v386_v47 = vrot.slane %v385_v35, 2  ;;  %v392_v50 = vrot.slane %v391_v43, 2  ;;  %v399_v53 = vadd.f32 %v398_v48, %v397_v36  ;;  %v590_v25 = vld [vmem:[%s2028_s1 + $0x8] sm:$0xff] (!%p937_p5)  ;;  %v621_v28 = vld [vmem:[%s2028_s1 + $0x100] sm:$0xff] (!%p937_p5)  ;;  %v591_v38 = vld [vmem:[%s2028_s1 + $0x10] sm:$0xff] (!%p937_p5) }
  0x2f   : > { %1183 = vmatpush3.bf16.msra.mxu1 %v1182_v17  ;;  %1153 = vmatprep.subr.bf16.mxu0 %v1152_v18  ;;  %v381_v56 = vadd.f32 %v380_v49, %v379_v40  ;;  %v622_v29 = vld [vmem:[%s2028_s1 + $0x108] sm:$0xff] (!%p937_p5)  ;;  %v592_v39 = vld [vmem:[%s2028_s1 + $0x18] sm:$0xff] (!%p937_p5)  ;;  %v623_v40 = vld [vmem:[%s2028_s1 + $0x110] sm:$0xff] (!%p937_p5) }
  0x30   : > { %1185 = vmatprep.subr.bf16.mxu1 %v1184_v22  ;;  %v387_v52 = vadd.f32 %v386_v47, %v385_v35  ;;  %v393_v58 = vadd.f32 %v392_v50, %v391_v43  ;;  %v400_v60 = vrot.slane %v399_v53, 1  ;;  %v1192_v22 = vpack.c.bf16 (!%p937_p5), %v606_v20, %v605_v19  ;;  %v640_v35 = vld [vmem:[%s2028_s1 + $0x198] sm:$0xff] (!%p937_p5)  ;;  %v609_v43 = vld [vmem:[%s2028_s1 + $0xa0] sm:$0xff] (!%p937_p5)  ;;  %v642_v48 = vld [vmem:[%s2028_s1 + $0x1a8] sm:$0xff] (!%p937_p5) }
  0x31   : > { %v382_v61 = vrot.slane %v381_v56, 1  ;;  %v1226_v32 = vpack.c.bf16 (!%p937_p5), %v622_v29, %v621_v28  ;;  %v1198_v41 = vpack.c.bf16 (!%p937_p5), %v592_v39, %v591_v38  ;;  %v624_v42 = vld [vmem:[%s2028_s1 + $0x118] sm:$0xff] (!%p937_p5)  ;;  %v641_v47 = vld [vmem:[%s2028_s1 + $0x1a0] sm:$0xff] (!%p937_p5)  ;;  %v599_v28 = vld [vmem:[%s2028_s1 + $0x50] sm:$0xff] (!%p937_p5)  ;;  %v563_v38 = vsub.s32 (!%p937_p5), 3, %v1519_v54 }
  0x32   : > { %1155 = vmatpush3.bf16.msra.mxu0 %v1154_v33  ;;  %v388_v59 = vrot.slane %v387_v52, 1  ;;  %v394_v62 = vrot.slane %v393_v58, 1  ;;  %v401_v0 = vadd.f32 %v400_v60, %v399_v53  ;;  %v608_v33 = vld [vmem:[%s2028_s1 + $0x98] sm:$0xff] (!%p937_p5)  ;;  %v1230_v45 = vpack.c.bf16 (!%p937_p5), %v624_v42, %v623_v40  ;;  %v593_v49 = vld [vmem:[%s2028_s1 + $0x20] sm:$0xff] (!%p937_p5)  ;;  %v626_v53 = vld [vmem:[%s2028_s1 + $0x128] sm:$0xff] (!%p937_p5) }
  0x33   : > { %1187 = vmatpush3.bf16.msra.mxu1 %v1186_v34  ;;  %1157 = vmatprep.subr.bf16.mxu0 %v1156_v37  ;;  %v383_v1 = vadd.f32 %v382_v61, %v381_v56  ;;  %v639_v34 = vld [vmem:[%s2028_s1 + $0x190] sm:$0xff] (!%p937_p5)  ;;  %v1196_v36 = vpack.c.bf16 (!%p937_p5), %v608_v33, %v607_v30  ;;  %v1232_v50 = vpack.c.bf16 (!%p937_p5), %v642_v48, %v641_v47  ;;  %v612_v57 = vld [vmem:[%s2028_s1 + $0xb8] sm:$0xff] (!%p937_p5)  ;;  %v450_v33 = vadd.s32 (!%p937_p5), 16, %v1519_v54  ;;  %v649_v39 = vld [vmem:[%s2028_s1 + $0x1e0] sm:$0xff] (!%p937_p5) }
  0x34   : > { %1189 = vmatprep.subr.bf16.mxu1 %v1188_v44  ;;  %v389_v63 = vadd.f32 %v388_v59, %v387_v52  ;;  %v395_v3 = vadd.f32 %v394_v62, %v393_v58  ;;  %v1228_v37 = vpack.c.bf16 (!%p937_p5), %v640_v35, %v639_v34  ;;  %v610_v44 = vld [vmem:[%s2028_s1 + $0xa8] sm:$0xff] (!%p937_p5)  ;;  %v625_v52 = vld [vmem:[%s2028_s1 + $0x120] sm:$0xff] (!%p937_p5)  ;;  %v611_v56 = vld [vmem:[%s2028_s1 + $0xb0] sm:$0xff] (!%p937_p5) }
  0x35   : > { %v1200_v46 = vpack.c.bf16 (!%p937_p5), %v610_v44, %v609_v43  ;;  %v643_v58 = vld [vmem:[%s2028_s1 + $0x1b0] sm:$0xff] (!%p937_p5)  ;;  %v1234_v59 = vpack.c.bf16 (!%p937_p5), %v626_v53, %v625_v52  ;;  %v1204_v60 = vpack.c.bf16 (!%p937_p5), %v612_v57, %v611_v56  ;;  %v644_v61 = vld [vmem:[%s2028_s1 + $0x1b8] sm:$0xff] (!%p937_p5)  ;;  %v650_v40 = vld [vmem:[%s2028_s1 + $0x1e8] sm:$0xff] (!%p937_p5)  ;;  %v1744_v52 = vmul.u32 (!%p937_p5), 16, %v450_v33 }
  0x36   : > { %1159 = vmatpush3.bf16.msra.mxu0 %v1158_v51  ;;  %v406_v4 = vcombine.low %v383_v1, %v389_v63  ;;  %v407_v5 = vcombine.low %v395_v3, %v401_v0  ;;  %v594_v51 = vld [vmem:[%s2028_s1 + $0x28] sm:$0xff] (!%p937_p5)  ;;  %v595_v62 = vld [vmem:[%s2028_s1 + $0x30] sm:$0xff] (!%p937_p5)  ;;  %v596_v63 = vld [vmem:[%s2028_s1 + $0x38] sm:$0xff] (!%p937_p5)  ;;  %v1236_v0 = vpack.c.bf16 (!%p937_p5), %v644_v61, %v643_v58  ;;  %v1248_v53 = vpack.c.bf16 (!%p937_p5), %v650_v40, %v649_v39 }
  0x37   : > { %1191 = vmatpush3.bf16.msra.mxu1 %v1190_v55  ;;  %1193 = vmatprep.subr.bf16.mxu0 (!%p937_p5), %v1192_v22  ;;  %v1202_v55 = vpack.c.bf16 (!%p937_p5), %v594_v51, %v593_v49  ;;  %v627_v1 = vld [vmem:[%s2028_s1 + $0x130] sm:$0xff] (!%p937_p5)  ;;  %v613_v3 = vld [vmem:[%s2028_s1 + $0xc0] sm:$0xff] (!%p937_p5)  ;;  %v648_v22 = vld [vmem:[%s2028_s1 + $0x1d8] sm:$0xff] (!%p937_p5)  ;;  %v2058_v33 = vmov (!%p937_p5), 0 }
  0x38   : > { %v414_v6 = vrot.slane %v406_v4, %v413_v2  ;;  %v421_v7 = vrot.slane %v407_v5, %v413_v2  ;;  %v1629_v4 = vand.u32 (!%p937_p5), 127, %v411_v31  ;;  %v1632_v5 = vmul.u32 (!%p937_p5), 16, %v1519_v54  ;;  %v600_v29 = vld [vmem:[%s2028_s1 + $0x58] sm:$0xff] (!%p937_p5)  ;;  %v631_v30 = vld [vmem:[%s2028_s1 + $0x150] sm:$0xff] (!%p937_p5)  ;;  %v601_v42 = vld [vmem:[%s2028_s1 + $0x60] sm:$0xff] (!%p937_p5) }
  0x39   : > { %298 = vmatmul.mubr.f32.vlgmr.msra.gmra.mrb[0].mxu0 %v165_v26  ;;  %v1224_v26 = vpack.c.bf16 (!%p937_p5), %v638_v23, %v637_v21  ;;  %v647_v21 = vld [vmem:[%s2028_s1 + $0x1d0] sm:$0xff] (!%p937_p5)  ;;  %v632_v35 = vld [vmem:[%s2028_s1 + $0x158] sm:$0xff] (!%p937_p5)  ;;  %v602_v43 = vld [vmem:[%s2028_s1 + $0x68] sm:$0xff] (!%p937_p5) }
  0x3a   : > { %368 = vmatmul.mubr.f32.vlgmr.msra.gmra.mrb[0].mxu1 %v167_v27  ;;  %v422_v8 = vcombine.low %v414_v6, %v421_v7  ;;  %v1194_v27 = vpack.c.bf16 (!%p937_p5), %v590_v25, %v589_v24  ;;  %v614_v6 = vld [vmem:[%s2028_s1 + $0xc8] sm:$0xff] (!%p937_p5)  ;;  %v645_v7 = vld [vmem:[%s2028_s1 + $0x1c0] sm:$0xff] (!%p937_p5)  ;;  %v1663_v19 = vadd.s32 (!%p937_p5), 128, %v1629_v4  ;;  %v1666_v20 = vadd.s32 (!%p937_p5), 16, %v1632_v5  ;;  %v620_v56 = vld [vmem:[%s2028_s1 + $0xf8] sm:$0xff] (!%p937_p5) }
  0x3b   : > { %1225 = vmatprep.subr.bf16.mxu1 (!%p937_p5), %v1224_v26  ;;  %v555_v24 = vsub.s32 (!%p937_p5), 1, %v1519_v54  ;;  %v1676_v25 = vadd.s32 (!%p937_p5), 384, %v1629_v4  ;;  %v1244_v34 = vpack.c.bf16 (!%p937_p5), %v648_v22, %v647_v21  ;;  %v633_v44 = vld [vmem:[%s2028_s1 + $0x160] sm:$0xff] (!%p937_p5)  ;;  %v634_v48 = vld [vmem:[%s2028_s1 + $0x168] sm:$0xff] (!%p937_p5)  ;;  %v651_v61 = vld [vmem:[%s2028_s1 + $0x1f0] sm:$0xff] (!%p937_p5)  ;;  %vm458_vm9 = vcmp.ge.s32.totalorder (!%p937_p5), %v1629_v4, %v1632_v5 }
  0x3c   : > { %v429_v10 = vrot.slane %v422_v8, %v413_v2  ;;  %1195 = vmatpush3.bf16.msra.mxu0 (!%p937_p5), %v1194_v27  ;;  %1227 = vmatpush3.bf16.msra.mxu1 (!%p937_p5), %v1226_v32  ;;  %v628_v2 = vld [vmem:[%s2028_s1 + $0x138] sm:$0xff] (!%p937_p5)  ;;  %v646_v8 = vld [vmem:[%s2028_s1 + $0x1c8] sm:$0xff] (!%p937_p5)  ;;  %vm459_vm3 = vcmp.ge.s32.totalorder (!%p937_p5), %v1663_v19, %v1632_v5  ;;  %vm484_vm4 = vcmp.lt.s32.totalorder (!%p937_p5), %v1663_v19, %v1666_v20  ;;  %v2044_v22 = vmov (!%p937_p5), 0 }
  0x3d   : > { %1197 = vmatprep.subr.bf16.mxu0 (!%p937_p5), %v1196_v36  ;;  %1229 = vmatprep.subr.bf16.mxu1 (!%p937_p5), %v1228_v37  ;;  %v1238_v31 = vpack.c.bf16 (!%p937_p5), %v628_v2, %v627_v1  ;;  %v617_v36 = vld [vmem:[%s2028_s1 + $0xe0] sm:$0xff] (!%p937_p5)  ;;  %v618_v37 = vld [vmem:[%s2028_s1 + $0xe8] sm:$0xff] (!%p937_p5)  ;;  %vm461_vm5 = vcmp.ge.s32.totalorder (!%p937_p5), %v1676_v25, %v1632_v5  ;;  %vm486_vm6 = vcmp.lt.s32.totalorder (!%p937_p5), %v1676_v25, %v1666_v20  ;;  %vm1737_vm7 = vmand (!%p937_p5), %vm459_vm3, %vm484_vm4 }
  0x3e   : > { %v431_v11 = vadd.f32 %v429_v10, %v377_v9  ;;  %v1206_v9 = vpack.c.bf16 (!%p937_p5), %v596_v63, %v595_v62  ;;  %v1208_v10 = vpack.c.bf16 (!%p937_p5), %v614_v6, %v613_v3  ;;  %v1216_v47 = vpack.c.bf16 (!%p937_p5), %v618_v37, %v617_v36  ;;  %v652_v62 = vld [vmem:[%s2028_s1 + $0x1f8] sm:$0xff] (!%p937_p5)  ;;  %vm1774_vm8 = vmand (!%p937_p5), %vm461_vm5, %vm486_vm6  ;;  %v603_v3 = vld [vmem:[%s2028_s1 + $0x70] sm:$0xff] (!%p937_p5) }
  0x3f   : > { %vm483_vm10 = vcmp.lt.s32.totalorder (!%p937_p5), %v1629_v4, %v1666_v20  ;;  %v1250_v1 = vpack.c.bf16 (!%p937_p5), %v634_v48, %v633_v44  ;;  %v604_v6 = vld [vmem:[%s2028_s1 + $0x78] sm:$0xff] (!%p937_p5) }
  0x40   : > { %436 = vst.msk [vmem:[#allocation2] sm:$0xf] %vm434_vm1, %v431_v11  ;;  %1199 = vmatpush3.bf16.msra.mxu0 (!%p937_p5), %v1198_v41  ;;  %1231 = vmatpush3.bf16.msra.mxu1 (!%p937_p5), %v1230_v45  ;;  %v597_v11 = vld [vmem:[%s2028_s1 + $0x40] sm:$0xff] (!%p937_p5)  ;;  %v1214_v41 = vpack.c.bf16 (!%p937_p5), %v600_v29, %v599_v28  ;;  %v1724_v45 = vadd.s32 (!%p937_p5), 256, %v1629_v4  ;;  %vm1820_vm15 = vmand (!%p937_p5), %vm458_vm9, %vm483_vm10  ;;  %vm467_vm10 = vcmp.ge.s32.totalorder (!%p937_p5), %v1663_v19, %v1744_v52  ;;  %v2052_v29 = vmov (!%p937_p5), 0 }
  0x41   : > { %1201 = vmatprep.subr.bf16.mxu0 (!%p937_p5), %v1200_v46  ;;  %1233 = vmatprep.subr.bf16.mxu1 (!%p937_p5), %v1232_v50  ;;  %v1246_v46 = vpack.c.bf16 (!%p937_p5), %v632_v35, %v631_v30  ;;  %v2054_v30 = vmov (!%p937_p5), 0 }
  0x42   : > { %vm460_vm11 = vcmp.ge.s32.totalorder (!%p937_p5), %v1724_v45, %v1632_v5  ;;  %vm485_vm12 = vcmp.lt.s32.totalorder (!%p937_p5), %v1724_v45, %v1666_v20 }
  0x43   : > { %vm1837_vm3 = vmand (!%p937_p5), %vm460_vm11, %vm485_vm12 }
  0x44   : > { %1203 = vmatpush3.bf16.msra.mxu0 (!%p937_p5), %v1202_v55  ;;  %1235 = vmatpush3.bf16.msra.mxu1 (!%p937_p5), %v1234_v59  ;;  %v619_v55 = vld [vmem:[%s2028_s1 + $0xf0] sm:$0xff] (!%p937_p5)  ;;  %v451_v59 = vadd.s32 (!%p937_p5), 24, %v1519_v54 }
  0x45   : > { %1205 = vmatprep.subr.bf16.mxu0 (!%p937_p5), %v1204_v60  ;;  %1237 = vmatprep.subr.bf16.mxu1 (!%p937_p5), %v1236_v0  ;;  %v878_v60 = vld [vmem:[%s2029_s2] sm:$0x1] (!%p937_p5)  ;;  %v1218_v0 = vpack.c.bf16 (!%p937_p5), %v602_v43, %v601_v42  ;;  %v1220_v2 = vpack.c.bf16 (!%p937_p5), %v620_v56, %v619_v55 }
  0x46   : > { %880 = vrot.lane.b32.xlu0 (!%p937_p5), %v878_v60, %s1280_s22 }
  0x47   : > { %v1729_v49 = vld [vmem:[#allocation2] sm:$0xf] (!%p937_p5) }
  0x48   : > { %1207 = vmatpush3.bf16.msra.mxu0 (!%p937_p5), %v1206_v9  ;;  %1239 = vmatpush3.bf16.msra.mxu1 (!%p937_p5), %v1238_v31  ;;  %v1753_v57 = vrot.slane (!%p937_p5), %v1729_v49, %v555_v24  ;;  %v1756_v58 = vrot.slane (!%p937_p5), %v1729_v49, %v563_v38  ;;  %v635_v9 = vld [vmem:[%s2028_s1 + $0x170] sm:$0xff] (!%p937_p5)  ;;  %v636_v31 = vld [vmem:[%s2028_s1 + $0x178] sm:$0xff] (!%p937_p5)  ;;  %v2046_v24 = vmov (!%p937_p5), 0 }
  0x49   : > { %1209 = vmatprep.subr.bf16.mxu0 (!%p937_p5), %v1208_v10  ;;  %v480_v10 = vadd.s32 (!%p937_p5), 16, %v1744_v52 }
  0x4a   : > { %938 = vmatprep.mubr.msk.f32.mxu0 (!%p937_p5), %vm1737_vm7, %v1753_v57  ;;  %948 = vmatprep.mubr.msk.f32.mxu1 (!%p937_p5), %vm1774_vm8, %v1756_v58 }
  0x4b   : > { %vm492_vm11 = vcmp.lt.s32.totalorder (!%p937_p5), %v1663_v19, %v480_v10 }
 0x10c   : > { %v996_v12 = vpop.f32.mrb[0].mxu0 }
 0x10d   : > { %v1031_v13 = vpop.f32.mrb[0].mxu1  ;;  %v997_v14 = vpop.f32.mrb[1].mxu0  ;;  %440 = sbr.rel (%p937_p5) target bundleno = 766 (0x2fe), region = 40 }
 0x10e   : > { %v998_v15 = vadd.f32 %v997_v14, %v996_v12  ;;  %v1032_v16 = vpop.f32.mrb[1].mxu1  ;;  %v598_v12 = vld [vmem:[%s2028_s1 + $0x48] sm:$0xff] (!%p937_p5)  ;;  %v449_v14 = vadd.s32 (!%p937_p5), 8, %v1519_v54 }
 0x10f   : > { %v1033_v17 = vadd.f32 %v1032_v16, %v1031_v13  ;;  %v629_v13 = vld [vmem:[%s2028_s1 + $0x140] sm:$0xff] (!%p937_p5)  ;;  %v630_v16 = vld [vmem:[%s2028_s1 + $0x148] sm:$0xff] (!%p937_p5)  ;;  %v1210_v23 = vpack.c.bf16 (!%p937_p5), %v598_v12, %v597_v11  ;;  %v1812_v11 = vmul.u32 (!%p937_p5), 16, %v451_v59 }
 0x110   : > { %v1242_v26 = vpack.c.bf16 (!%p937_p5), %v630_v16, %v629_v13  ;;  %v1687_v32 = vmul.u32 (!%p937_p5), 16, %v449_v14  ;;  %v1825_v13 = vsub.s32 (!%p937_p5), 0, %v1519_v54  ;;  %v1222_v14 = vpack.c.bf16 (!%p937_p5), %v604_v6, %v603_v3  ;;  %v881_v6 = vpop.permute.xlu0 (!%p937_p5), %880 }
 0x111   : > { %v370_v18 = vadd.f32 %v1033_v17, %v998_v15  ;;  %v1240_v15 = vpack.c.bf16 (!%p937_p5), %v646_v8, %v645_v7  ;;  %v615_v17 = vld [vmem:[%s2028_s1 + $0xd0] sm:$0xff] (!%p937_p5)  ;;  %1211 = vmatpush3.bf16.msra.mxu0 (!%p937_p5), %v1210_v23  ;;  %v1798_v7 = vadd.s32 (!%p937_p5), 32, %v1519_v54  ;;  %v1252_v8 = vpack.c.bf16 (!%p937_p5), %v652_v62, %v651_v61 }
 0x112   : > { %v1742_v51 = vadd.s32 (!%p937_p5), 16, %v1687_v32  ;;  %vm463_vm13 = vcmp.ge.s32.totalorder (!%p937_p5), %v1663_v19, %v1687_v32  ;;  %vm465_vm0 = vcmp.ge.s32.totalorder (!%p937_p5), %v1676_v25, %v1687_v32  ;;  %v559_v16 = vsub.s32 (!%p937_p5), 2, %v1519_v54 }
 0x113   : > { %376 = vst.msk [vmem:[%s374_s29] sm:$0xff] %vm2031_vm2, %v370_v18  ;;  %v616_v18 = vld [vmem:[%s2028_s1 + $0xd8] sm:$0xff] (!%p937_p5)  ;;  %1241 = vmatprep.subr.bf16.mxu1 (!%p937_p5), %v1240_v15  ;;  %vm462_vm4 = vcmp.ge.s32.totalorder (!%p937_p5), %v1629_v4, %v1687_v32  ;;  %vm464_vm7 = vcmp.ge.s32.totalorder (!%p937_p5), %v1724_v45, %v1687_v32  ;;  %v457_v54 = vmul.u32 (!%p937_p5), 16, %v1798_v7  ;;  %v481_v20 = vadd.s32 (!%p937_p5), 16, %v1812_v11 }
 0x114   : > { %v1212_v27 = vpack.c.bf16 %v616_v18, %v615_v17  ;;  %1243 = vmatpush3.bf16.msra.mxu1 %v1242_v26  ;;  %vm488_vm14 = vcmp.lt.s32.totalorder %v1663_v19, %v1742_v51  ;;  %vm490_vm1 = vcmp.lt.s32.totalorder %v1676_v25, %v1742_v51  ;;  %vm487_vm5 = vcmp.lt.s32.totalorder %v1629_v4, %v1742_v51 }
 0x115   : > { %1245 = vmatprep.subr.bf16.mxu1 %v1244_v34  ;;  %v1254_v17 = vpack.c.bf16 %v636_v31, %v635_v9  ;;  %vm1852_vm6 = vmand %vm463_vm13, %vm488_vm14  ;;  %vm489_vm8 = vcmp.lt.s32.totalorder %v1724_v45, %v1742_v51  ;;  %v552_v21 = vrot.slane %v1729_v49, %v1825_v13  ;;  %vm469_vm13 = vcmp.ge.s32.totalorder %v1676_v25, %v1744_v52 }
 0x116   : > { %1213 = vmatprep.subr.bf16.mxu0 %v1212_v27  ;;  %vm1867_vm9 = vmand %vm465_vm0, %vm490_vm1  ;;  %vm494_vm14 = vcmp.lt.s32.totalorder %v1676_v25, %v480_v10  ;;  %v560_v23 = vrot.slane %v1729_v49, %v559_v16  ;;  %vm466_vm1 = vcmp.ge.s32.totalorder %v1629_v4, %v1744_v52  ;;  %vm468_vm2 = vcmp.ge.s32.totalorder %v1724_v45, %v1744_v52 }
 0x117   : > { %1215 = vmatpush3.bf16.msra.mxu0 %v1214_v41  ;;  %vm1880_vm12 = vmand %vm462_vm4, %vm487_vm5  ;;  %vm491_vm4 = vcmp.lt.s32.totalorder %v1629_v4, %v480_v10  ;;  %v482_v27 = vadd.s32 16, %v457_v54  ;;  %v2056_v32 = vmov 0  ;;  %v2061_v34 = vmov 0 }
 0x118   : > { %1247 = vmatpush3.bf16.msra.mxu1 %v1246_v46  ;;  %1217 = vmatprep.subr.bf16.mxu0 %v1216_v47  ;;  %v2045_v22 = vsel %vm1880_vm12, 4294967295, %v2044_v22  ;;  %vm1888_vm0 = vmand %vm464_vm7, %vm489_vm8  ;;  %vm493_vm12 = vcmp.lt.s32.totalorder %v1724_v45, %v480_v10  ;;  %vm471_vm8 = vcmp.ge.s32.totalorder %v1663_v19, %v1812_v11 }
 0x119   : > { %1249 = vmatprep.subr.bf16.mxu1 %v1248_v53  ;;  %v2047_v24 = vsel %vm1888_vm0, 4294967295, %v2046_v24  ;;  %vm1895_vm5 = vmand %vm467_vm10, %vm492_vm11  ;;  %vm496_vm0 = vcmp.lt.s32.totalorder %v1663_v19, %v481_v20  ;;  %vm473_vm11 = vcmp.ge.s32.totalorder %v1676_v25, %v1812_v11 }
 0x11a   : > { %vm1902_vm7 = vmand %vm469_vm13, %vm494_vm14  ;;  %vm498_vm13 = vcmp.lt.s32.totalorder %v1676_v25, %v481_v20  ;;  %v884_v12 = vld [vmem:[%s2030_s3] sm:$0xff] }
 0x11b   : > { %1219 = vmatpush3.bf16.msra.mxu0 %v1218_v0  ;;  %vm1911_vm10 = vmand %vm466_vm1, %vm491_vm4  ;;  %vm495_vm1 = vcmp.lt.s32.totalorder %v1629_v4, %v481_v20 }
 0x11c   : > { %1251 = vmatpush3.bf16.msra.mxu1 %v1250_v1  ;;  %1221 = vmatprep.subr.bf16.mxu0 %v1220_v2  ;;  %v2053_v29 = vsel %vm1911_vm10, 4294967295, %v2052_v29  ;;  %vm1923_vm14 = vmand %vm468_vm2, %vm493_vm12  ;;  %vm500_vm2 = vcmp.lt.s32.totalorder %v1663_v19, %v482_v27  ;;  %vm477_vm12 = vcmp.ge.s32.totalorder %v1676_v25, %v457_v54  ;;  %vm2060_vm10 = vnez %v2045_v22 }
 0x11d   : > { %1253 = vmatprep.subr.bf16.mxu1 %v1252_v8  ;;  %v2055_v30 = vsel %vm1923_vm14, 4294967295, %v2054_v30  ;;  %vm1933_vm4 = vmand %vm471_vm8, %vm496_vm0  ;;  %vm502_vm14 = vcmp.lt.s32.totalorder %v1676_v25, %v482_v27  ;;  %vm472_vm0 = vcmp.ge.s32.totalorder %v1724_v45, %v1812_v11  ;;  %vm497_vm8 = vcmp.lt.s32.totalorder %v1724_v45, %v481_v20 }
 0x11e   : > { %v2057_v32 = vsel %vm1933_vm4, 4294967295, %v2056_v32  ;;  %vm2064_vm4 = vnez %v2053_v29 }
 0x11f   : > { %1223 = vmatpush3.bf16.msra.mxu0 %v1222_v14  ;;  %v959_v14 = vld [vmem:[%s2030_s3 + $0x8] sm:$0xff] }
 0x120   : > { %1255 = vmatpush3.bf16.msra.mxu1 %v1254_v17 }
 0x122   : > { %939 = vmatmul.mubr.msk.f32.vlgmr.msra.gmra.mrb[0].mxu0 %vm1820_vm15, %v552_v21  ;;  %vm470_vm15 = vcmp.ge.s32.totalorder %v1629_v4, %v1812_v11 }
 0x123   : > { %949 = vmatmul.mubr.msk.f32.vlgmr.msra.gmra.mrb[0].mxu1 %vm1837_vm3, %v560_v23  ;;  %940 = vmatprep.mubr.msk.f32.mxu0 %vm1852_vm6, %v1753_v57  ;;  %vm475_vm3 = vcmp.ge.s32.totalorder %v1663_v19, %v457_v54  ;;  %vm1939_vm6 = vmand %vm473_vm11, %vm498_vm13  ;;  %vm2063_vm11 = vnez %v2047_v24 }
 0x124   : > { %950 = vmatprep.mubr.msk.f32.mxu1 %vm1867_vm9, %v1756_v58  ;;  %v2059_v33 = vsel %vm1939_vm6, 4294967295, %v2058_v33  ;;  %vm1947_vm9 = vmand %vm470_vm15, %vm495_vm1  ;;  %vm527_vm6 = vcmp.eq.s32.totalorder %v1798_v7, 32  ;;  %vm474_vm1 = vcmp.ge.s32.totalorder %v1629_v4, %v457_v54 }
 0x125   : > { %v2062_v34 = vsel %vm1947_vm9, 4294967295, %v2061_v34  ;;  %vm520_vm13 = vmand %vm475_vm3, %vm500_vm2  ;;  %vm499_vm9 = vcmp.lt.s32.totalorder %v1629_v4, %v482_v27  ;;  %vm501_vm3 = vcmp.lt.s32.totalorder %v1724_v45, %v482_v27  ;;  %vm2065_vm2 = vnez %v2055_v30  ;;  %v958_v4 = vld [vmem:[%s2029_s2 + $0x1] ss:$0 sm:$0xff] }
 0x126   : > { %941 = vmatmul.mubr.msk.f32.gmra.mrb[2].mxu0 %vm2060_vm10, %v552_v21  ;;  %vm522_vm10 = vmand %vm477_vm12, %vm502_vm14  ;;  %851 = vrot.lane.b32.xlu1 %v958_v4, %s1281_s6 }
 0x127   : > { %951 = vmatmul.mubr.msk.f32.gmra.mrb[2].mxu1 %vm2063_vm11, %v560_v23  ;;  %942 = vmatprep.mubr.msk.f32.mxu0 %vm1895_vm5, %v1753_v57  ;;  %vm517_vm15 = vmand %vm472_vm0, %vm497_vm8  ;;  %vm476_vm5 = vcmp.ge.s32.totalorder %v1724_v45, %v457_v54  ;;  %vm2068_vm8 = vnez %v2062_v34 }
 0x128   : > { %952 = vmatprep.mubr.msk.f32.mxu1 %vm1902_vm7, %v1756_v58  ;;  %vm545_vm11 = vmor %vm520_vm13, %vm527_vm6  ;;  %vm2066_vm7 = vnez %v2057_v32 }
 0x129   : > { %vm547_vm14 = vmor %vm522_vm10, %vm527_vm6 }
 0x12a   : > { %943 = vmatmul.mubr.msk.f32.gmra.mrb[4].mxu0 %vm2064_vm4, %v552_v21  ;;  %vm2067_vm4 = vnez %v2059_v33  ;;  %vm519_vm12 = vmand %vm474_vm1, %vm499_vm9 }
 0x12b   : > { %953 = vmatmul.mubr.msk.f32.gmra.mrb[4].mxu1 %vm2065_vm2, %v560_v23  ;;  %944 = vmatprep.mubr.msk.f32.mxu0 %vm2066_vm7, %v1753_v57  ;;  %vm521_vm0 = vmand %vm476_vm5, %vm501_vm3 }
 0x12c   : > { %954 = vmatprep.mubr.msk.f32.mxu1 %vm2067_vm4, %v1756_v58  ;;  %vm544_vm13 = vmor %vm519_vm12, %vm527_vm6 }
 0x12d   : > { %vm546_vm10 = vmor %vm521_vm0, %vm527_vm6  ;;  %vm2069_vm6 = vcmask 64512  }
 0x12e   : > { %945 = vmatmul.mubr.msk.f32.gmra.mrb[6].mxu0 %vm2068_vm8, %v552_v21  ;;  %vm2070_vm9 = vmmov %vm2069_vm6 }
 0x12f   : > { %955 = vmatmul.mubr.msk.f32.gmra.mrb[6].mxu1 %vm517_vm15, %v560_v23  ;;  %946 = vmatprep.mubr.msk.f32.mxu0 %vm545_vm11, %v1753_v57  ;;  %vm2071_vm15 = vmmov %vm2069_vm6 }
 0x130   : > { %956 = vmatprep.mubr.msk.f32.mxu1 %vm547_vm14, %v1756_v58  ;;  %vm2072_vm1 = vmmov %vm2069_vm6 }
 0x131   : > { %vm2073_vm11 = vmmov %vm2072_vm1 }
 0x132   : > { %947 = vmatmul.mubr.msk.f32.gmra.mrb[8].mxu0 %vm544_vm13, %v552_v21  ;;  %vm2074_vm5 = vmmov %vm2072_vm1 }
 0x133   : > { %957 = vmatmul.mubr.msk.f32.gmra.mrb[8].mxu1 %vm546_vm10, %v560_v23 }
 0x198   : > { %v852_v10 = vpop.permute.xlu1 %851 }
 0x1f5   : > { %v1066_v19 = vpop.f32.mrb[0].mxu0 }
 0x1f6   : > { %v1113_v25 = vpop.f32.mrb[0].mxu1  ;;  %v1067_v35 = vpop.f32.mrb[1].mxu0 }
 0x1f7   : > { %v1068_v36 = vadd.f32 %v1067_v35, %v1066_v19  ;;  %v1114_v37 = vpop.f32.mrb[1].mxu1 }
 0x1f8   : > { %v1115_v38 = vadd.f32 %v1114_v37, %v1113_v25 }
 0x1f9   : > { %v1069_v39 = vpop.f32.mrb[2].mxu0 }
 0x1fa   : > { %v810_v40 = vadd.f32 %v1115_v38, %v1068_v36  ;;  %v1116_v41 = vpop.f32.mrb[2].mxu1  ;;  %v1070_v42 = vpop.f32.mrb[3].mxu0 }
 0x1fb   : > { %v1071_v43 = vadd.f32 %v1070_v42, %v1069_v39  ;;  %v1117_v44 = vpop.f32.mrb[3].mxu1 }
 0x1fc   : > { %v1118_v45 = vadd.f32 %v1117_v44, %v1116_v41 }
 0x1fd   : > { %v1072_v46 = vpop.f32.mrb[4].mxu0 }
 0x1fe   : > { %v815_v47 = vadd.f32 %v1118_v45, %v1071_v43  ;;  %v1119_v48 = vpop.f32.mrb[4].mxu1  ;;  %v1073_v49 = vpop.f32.mrb[5].mxu0 }
 0x1ff   : > { %v1074_v50 = vadd.f32 %v1073_v49, %v1072_v46  ;;  %v1120_v51 = vpop.f32.mrb[5].mxu1 }
 0x200   : > { %v1121_v52 = vadd.f32 %v1120_v51, %v1119_v48 }
 0x201   : > { %v1075_v53 = vpop.f32.mrb[6].mxu0 }
 0x202   : > { %v820_v55 = vadd.f32 %v1121_v52, %v1074_v50  ;;  %v1122_v56 = vpop.f32.mrb[6].mxu1  ;;  %v1076_v57 = vpop.f32.mrb[7].mxu0 }
 0x203   : > { %v1077_v58 = vadd.f32 %v1076_v57, %v1075_v53  ;;  %v1123_v59 = vpop.f32.mrb[7].mxu1 }
 0x204   : > { %v1124_v60 = vadd.f32 %v1123_v59, %v1122_v56 }
 0x205   : > { %v1078_v61 = vpop.f32.mrb[8].mxu0 }
 0x206   : > { %v825_v62 = vadd.f32 %v1124_v60, %v1077_v58  ;;  %v1125_v63 = vpop.f32.mrb[8].mxu1  ;;  %v1079_v0 = vpop.f32.mrb[9].mxu0 }
 0x207   : > { %v1080_v1 = vadd.f32 %v1079_v0, %v1078_v61  ;;  %v1126_v2 = vpop.f32.mrb[9].mxu1 }
 0x208   : > { %v1127_v3 = vadd.f32 %v1126_v2, %v1125_v63 }
 0x20a   : > { %v830_v7 = vadd.f32 %v1127_v3, %v1080_v1 }
 0x20c   : > { %v883_v8 = vadd.f32 %v881_v6, %v830_v7  ;;  %v836_v9 = vrot.slane %v830_v7, %v1825_v13 }
 0x20e   : > { %v888_v31 = vrot.slane %v883_v8, %v1825_v13  ;;  %838 = vrot.lane.b32.xlu0 %v836_v9, %s1282_s7 }
 0x210   : > { %890 = vrot.lane.b32.xlu1 %v888_v31, %s1283_s8 }
 0x280   : > { %v839_v11 = vpop.permute.xlu0 %838 }
 0x281   : > { %v841_v15 = vadd.f32 %v839_v11, %v810_v40  ;;  %v842_v16 = vadd.f32 %v839_v11, %v815_v47  ;;  %v843_v17 = vadd.f32 %v839_v11, %v820_v55  ;;  %v844_v5 = vadd.f32 %v839_v11, %v825_v62 }
 0x282   : > { %v891_v54 = vpop.permute.xlu1 %890 }
 0x283   : > { %v893_v13 = vadd.f32 %v891_v54, %v884_v12  ;;  %v897_v18 = vadd.f32 %v959_v14, %v891_v54  ;;  %v855_v20 = vadd.f32 %v852_v10, %v842_v16  ;;  %v854_v21 = vadd.f32 %v852_v10, %v841_v15 }
 0x284   : > { %v857_v22 = vadd.f32 %v852_v10, %v844_v5  ;;  %v856_v23 = vadd.f32 %v852_v10, %v843_v17 }
 0x285   : > { %894 = vst.msk [vmem:[%s2030_s3] sm:$0xff] %vm2069_vm6, %v893_v13  ;;  %864 = vrot.lane.b32.xlu1 %v855_v20, %s1282_s7  ;;  %862 = vrot.lane.b32.xlu0 %v854_v21, %s1282_s7 }
 0x286   : > { %960 = vst.msk [vmem:[%s2030_s3 + $0x8] sm:$0xff] %vm2070_vm9, %v897_v18 }
 0x289   : > { %868 = vrot.lane.b32.xlu1 %v857_v22, %s1282_s7  ;;  %866 = vrot.lane.b32.xlu0 %v856_v23, %s1282_s7 }
 0x2f7   : > { %v865_v24 = vpop.permute.xlu1 %864  ;;  %v863_v26 = vpop.permute.xlu0 %862 }
 0x2f8   : > { %875 = vst.msk [vmem:[%s2030_s3 + $0x18] sm:$0xff] %vm2071_vm15, %v865_v24 }
 0x2f9   : > { %874 = vst.msk [vmem:[%s2030_s3 + $0x10] sm:$0xff] %vm2072_vm1, %v863_v26 }
 0x2fb   : > { %v869_v27 = vpop.permute.xlu1 %868  ;;  %v867_v28 = vpop.permute.xlu0 %866 }
 0x2fc   : > { %877 = vst.msk [vmem:[%s2030_s3 + $0x28] sm:$0xff] %vm2073_vm11, %v869_v27 }
 0x2fd   : > { %876 = vst.msk [vmem:[%s2030_s3 + $0x20] sm:$0xff] %vm2074_vm5, %v867_v28 }
 0x2fe PF: > { %s13_s12 = sadd.s32 1, %s1276_s12  }
 0x2ff   : > { %p10_p6 = scmp.ge.s32.totalorder %s13_s12, 4  }
 0x301   :  { %12 = sbr.rel (!%p10_p6) target bundleno = 1 (0x1), region = 68 }

</bundles_post_ra>
